<compile_context>
chip_gen: v7x
topology: tpu7x:2x2x1
jax: 0.10.0
libtpu: 0.0.40
codegen_flags: <defaults>
</compile_context>

<pallas_src>
import math

import jax
import jax.numpy as jnp
from jax.experimental import pallas as pl
from jax.experimental.pallas import tpu as pltpu


# --------------------------------------------------------------- kernels ---

def _gate_kernel_split(a_ref, b_ref, wa_ref, wb_ref, wab_ref, bias_ref, out_ref):
    a = a_ref[...]
    b = b_ref[...]
    mm = wa_ref.dtype                       # matmul operand dtype (f32 or bf16)
    a32 = a.astype(jnp.float32)
    b32 = b.astype(jnp.float32)

    # Linear(3D -> D) on cat([a, b, a*b]) == sum of three DxD matmuls.
    logits = (jnp.dot(a.astype(mm), wa_ref[...], preferred_element_type=jnp.float32)
              + jnp.dot(b.astype(mm), wb_ref[...], preferred_element_type=jnp.float32)
              + jnp.dot((a32 * b32).astype(mm), wab_ref[...],
                        preferred_element_type=jnp.float32)
              + bias_ref[...].astype(jnp.float32))

    # sigmoid(x) == 0.5*tanh(0.5*x) + 0.5 : one EUP op, inherently stable.
    alpha = 0.5 * jnp.tanh(0.5 * logits) + 0.5
    # alpha*a + (1-alpha)*b == b + alpha*(a-b)
    out_ref[...] = (b32 + alpha * (a32 - b32)).astype(out_ref.dtype)


def _gate_kernel_stacked(a_ref, b_ref, w_ref, bias_ref, out_ref):
    a = a_ref[...]
    b = b_ref[...]
    mm = w_ref.dtype
    a32 = a.astype(jnp.float32)
    b32 = b.astype(jnp.float32)

    # Lane-aligned concat (D % 128 == 0): one MXU weight push, K = 3D.
    x = jnp.concatenate(
        [a.astype(mm), b.astype(mm), (a32 * b32).astype(mm)], axis=-1)
    logits = (jnp.dot(x, w_ref[...], preferred_element_type=jnp.float32)
              + bias_ref[...].astype(jnp.float32))

    alpha = 0.5 * jnp.tanh(0.5 * logits) + 0.5
    out_ref[...] = (b32 + alpha * (a32 - b32)).astype(out_ref.dtype)


# ---------------------------------------------------------------- tiling ---

def _choose_row_tile(m, d, act_itemsize, *, target_bytes=2 << 20,
                     min_tile=256, max_tile=8192):
    """Rows per block so one input block is ~target_bytes (multiple of 8)."""
    t = target_bytes // max(1, d * act_itemsize)
    t = int(min(max_tile, max(min_tile, t)))
    t = max(8, (t // 8) * 8)
    if t >= m:
        if m > 8:
            # keep >= 2 grid steps so v7x's second TensorCore is used
            t = ((((m + 1) // 2) + 7) // 8) * 8
        else:
            t = m                       # block dim == full dim is always legal
    return t


def _make_spec(shape, index_map, buffers=None):
    if buffers is None:
        return pl.BlockSpec(shape, index_map)
    try:
        return pl.BlockSpec(shape, index_map, pipeline_mode=pl.Buffered(buffers))
    except TypeError:                   # older BlockSpec: falls back to default
        return pl.BlockSpec(shape, index_map)


# --------------------------------------------------------------- wrapper ---

def gate_mechanism_pallas(tensor_a, tensor_b, weight, bias, *,
                          row_tile=None, weight_dtype=None, stacked=None,
                          row_buffers=2, vmem_limit_bytes=None):
    """tensor_a/tensor_b: [..., D]; weight: (D, 3D) PyTorch layout; bias: (D,)."""
    assert tensor_a.shape == tensor_b.shape, "gate inputs must share a shape"
    *lead, D = tensor_a.shape
    assert weight.shape == (D, 3 * D), "weight must be (D, 3*D) (PyTorch layout)"
    M = math.prod(lead) if lead else 1
    out_dtype = tensor_a.dtype

    a = tensor_a.reshape(M, D)
    b = tensor_b.reshape(M, D)

    # Weights are tiny relative to activations: casting them here is cheap.
    if weight_dtype is not None:
        weight = weight.astype(weight_dtype)
    bias2d = bias.reshape(1, D).astype(jnp.float32)

    act_itemsize = jnp.dtype(a.dtype).itemsize
    out_itemsize = jnp.dtype(out_dtype).itemsize
    w_itemsize = jnp.dtype(weight.dtype).itemsize

    if stacked is None:
        stacked = (D % 128 == 0)        # lane-aligned concat only when D%128==0

    if row_tile is None:
        row_tile = _choose_row_tile(M, D, act_itemsize)
    assert row_tile == M or row_tile % 8 == 0, \
        "row_tile must be a multiple of 8 or equal the row count"
    grid = (pl.cdiv(M, row_tile),)      # partial last block handled by masking

    row_in_spec = _make_spec((row_tile, D), lambda i: (i, 0),
                             None if row_buffers == 2 else row_buffers)
    out_spec = pl.BlockSpec((row_tile, D), lambda i: (i, 0))
    bias_spec = _make_spec((1, D), lambda i: (0, 0), 1)       # loop-invariant

    if stacked:
        kernel = _gate_kernel_stacked
        w_specs = [_make_spec((3 * D, D), lambda i: (0, 0), 1)]
        w_args = [weight.T]                                   # (3D, D)
    else:
        kernel = _gate_kernel_split
        w_specs = [_make_spec((D, D), lambda i: (0, 0), 1) for _ in range(3)]
        w_args = [weight[:, :D].T, weight[:, D:2 * D].T, weight[:, 2 * D:].T]

    cost = pl.CostEstimate(
        flops=2 * M * D * (3 * D) + 8 * M * D,
        transcendentals=M * D,
        bytes_accessed=((2 * act_itemsize + out_itemsize) * M * D
                        + 3 * D * D * w_itemsize + 4 * D),
    )

    if vmem_limit_bytes is None:
        blk = row_tile * D
        budget = (row_buffers * 2 * blk * act_itemsize       # pipelined a, b
                  + 2 * blk * out_itemsize                    # pipelined out
                  + 3 * D * D * w_itemsize + 4 * D            # weights + bias
                  + 6 * blk * 4)                              # f32 temporaries
        vmem_limit_bytes = int(min(max(budget * 5 // 4 + (2 << 20), 16 << 20),
                                   64 << 20))                 # v7x physical cap

    out = pl.pallas_call(
        kernel,
        out_shape=jax.ShapeDtypeStruct((M, D), out_dtype),
        grid_spec=pltpu.PrefetchScalarGridSpec(
            num_scalar_prefetch=0,
            grid=grid,
            in_specs=[row_in_spec, row_in_spec] + w_specs + [bias_spec],
            out_specs=out_spec,
        ),
        compiler_params=pltpu.CompilerParams(
            dimension_semantics=("parallel",),
            vmem_limit_bytes=vmem_limit_bytes),
        cost_estimate=cost,
    )(a, b, *w_args, bias2d)

    return out.reshape(tensor_a.shape)


# ------------------------------------------------------------- reference ---

def _reference(a, b, weight, bias):
    """Pure-JAX mirror of the PyTorch gate_mechanism.forward."""
    alpha = jax.nn.sigmoid(jnp.concatenate([a, b, a * b], axis=-1) @ weight.T + bias)
    return alpha * a + (1.0 - alpha) * b


# ------------------------------------------------------------------ main ---

if __name__ == "__main__":
    root_key = jax.random.PRNGKey(0)

    def run_check(B, L, D, *, weight_dtype=None, stacked=None, tol):
        k = jax.random.fold_in(root_key, B * 100000 + L * 1000 + D)
        ka, kb, kw, kbias = jax.random.split(k, 4)
        a = jax.random.normal(ka, (B, L, D), dtype=jnp.float32)
        b = jax.random.normal(kb, (B, L, D), dtype=jnp.float32)
        bound = 1.0 / math.sqrt(3 * D)          # PyTorch nn.Linear default init
        w = jax.random.uniform(kw, (D, 3 * D), minval=-bound, maxval=bound,
                               dtype=jnp.float32)
        bias = jax.random.uniform(kbias, (D,), minval=-bound, maxval=bound,
                                  dtype=jnp.float32)

        out = gate_mechanism_pallas(a, b, w, bias,
                                    weight_dtype=weight_dtype, stacked=stacked)
        out = jax.block_until_ready(out)
        ref = _reference(a, b, w, bias)
        assert out.shape == a.shape
        assert jnp.allclose(out, ref, atol=tol, rtol=tol), \
            f"mismatch vs reference (B={B}, L={L}, D={D}, wdt={weight_dtype})"

    # primary small shape implied by the module: batch=2, seq=8, emb_dim=32
    run_check(2, 8, 32, tol=1e-3)                               # split path, f32
    run_check(2, 8, 32, weight_dtype=jnp.bfloat16, tol=5e-2)    # bf16 MXU operands
    run_check(1, 20, 32, tol=1e-3)                              # ragged M (partial last block)
    run_check(2, 8, 128, tol=1e-3)                              # stacked path (D % 128 == 0)

    print("KERNEL_OK")
</pallas_src>

<mosaic_0001>
module attributes {stable_mosaic.version = 11 : i64} {
  func.func @_gate_kernel_split(%arg0: i32, %arg1: memref<8x32xf32, #tpu.memory_space<vmem>>, %arg2: memref<8x32xf32, #tpu.memory_space<vmem>>, %arg3: memref<32x32xf32, #tpu.memory_space<vmem>>, %arg4: memref<32x32xf32, #tpu.memory_space<vmem>>, %arg5: memref<32x32xf32, #tpu.memory_space<vmem>>, %arg6: memref<1x32xf32, #tpu.memory_space<vmem>>, %arg7: memref<8x32xf32, #tpu.memory_space<vmem>>) attributes {dimension_semantics = [#tpu.dimension_semantics<parallel>], iteration_bounds = array<i64: 2>, scalar_prefetch = 0 : i64, scratch_operands = 0 : i64, tpu.core_type = #tpu.core_type<tc>, window_params = [{transform_indices = @transform_0, window_bounds = array<i64: 8, 32>}, {transform_indices = @transform_1, window_bounds = array<i64: 8, 32>}, {pipeline_mode = #tpu.pipeline_mode<synchronous>, transform_indices = @transform_2, window_bounds = array<i64: 32, 32>}, {pipeline_mode = #tpu.pipeline_mode<synchronous>, transform_indices = @transform_3, window_bounds = array<i64: 32, 32>}, {pipeline_mode = #tpu.pipeline_mode<synchronous>, transform_indices = @transform_4, window_bounds = array<i64: 32, 32>}, {pipeline_mode = #tpu.pipeline_mode<synchronous>, transform_indices = @transform_5, window_bounds = array<i64: 1, 32>}, {transform_indices = @transform_6, window_bounds = array<i64: 8, 32>}]} {
    %c0 = arith.constant 0 : index
    %c0_0 = arith.constant 0 : index
    %0 = vector.load %arg1[%c0, %c0_0] : memref<8x32xf32, #tpu.memory_space<vmem>>, vector<8x32xf32>
    %c0_1 = arith.constant 0 : index
    %c0_2 = arith.constant 0 : index
    %1 = vector.load %arg2[%c0_1, %c0_2] : memref<8x32xf32, #tpu.memory_space<vmem>>, vector<8x32xf32>
    %c0_3 = arith.constant 0 : index
    %c0_4 = arith.constant 0 : index
    %2 = vector.load %arg3[%c0_3, %c0_4] : memref<32x32xf32, #tpu.memory_space<vmem>>, vector<32x32xf32>
    %cst = arith.constant dense<0.000000e+00> : vector<8x32xf32>
    %3 = tpu.matmul %0, %2, %cst {dimension_numbers = #tpu.dot_dimension_numbers<[1], [0], [0], [1], [0, 0, 1, 1], [], []>} : vector<8x32xf32>, vector<32x32xf32>, vector<8x32xf32> -> vector<8x32xf32>
    %c0_5 = arith.constant 0 : index
    %c0_6 = arith.constant 0 : index
    %4 = vector.load %arg4[%c0_5, %c0_6] : memref<32x32xf32, #tpu.memory_space<vmem>>, vector<32x32xf32>
    %cst_7 = arith.constant dense<0.000000e+00> : vector<8x32xf32>
    %5 = tpu.matmul %1, %4, %cst_7 {dimension_numbers = #tpu.dot_dimension_numbers<[1], [0], [0], [1], [0, 0, 1, 1], [], []>} : vector<8x32xf32>, vector<32x32xf32>, vector<8x32xf32> -> vector<8x32xf32>
    %6 = arith.addf %3, %5 : vector<8x32xf32>
    %7 = arith.mulf %0, %1 : vector<8x32xf32>
    %c0_8 = arith.constant 0 : index
    %c0_9 = arith.constant 0 : index
    %8 = vector.load %arg5[%c0_8, %c0_9] : memref<32x32xf32, #tpu.memory_space<vmem>>, vector<32x32xf32>
    %cst_10 = arith.constant dense<0.000000e+00> : vector<8x32xf32>
    %9 = tpu.matmul %7, %8, %cst_10 {dimension_numbers = #tpu.dot_dimension_numbers<[1], [0], [0], [1], [0, 0, 1, 1], [], []>} : vector<8x32xf32>, vector<32x32xf32>, vector<8x32xf32> -> vector<8x32xf32>
    %10 = arith.addf %6, %9 : vector<8x32xf32>
    %c0_11 = arith.constant 0 : index
    %c0_12 = arith.constant 0 : index
    %11 = vector.load %arg6[%c0_11, %c0_12] : memref<1x32xf32, #tpu.memory_space<vmem>>, vector<1x32xf32>
    %12 = vector.broadcast %11 : vector<1x32xf32> to vector<8x32xf32>
    %13 = arith.addf %10, %12 : vector<8x32xf32>
    %cst_13 = arith.constant 5.000000e-01 : f32
    %14 = vector.broadcast %cst_13 : f32 to vector<8x32xf32>
    %15 = arith.mulf %14, %13 : vector<8x32xf32>
    %16 = math.tanh %15 : vector<8x32xf32>
    %cst_14 = arith.constant 5.000000e-01 : f32
    %17 = vector.broadcast %cst_14 : f32 to vector<8x32xf32>
    %18 = arith.mulf %17, %16 : vector<8x32xf32>
    %cst_15 = arith.constant 5.000000e-01 : f32
    %19 = vector.broadcast %cst_15 : f32 to vector<8x32xf32>
    %20 = arith.addf %18, %19 : vector<8x32xf32>
    %21 = arith.subf %0, %1 : vector<8x32xf32>
    %22 = arith.mulf %20, %21 : vector<8x32xf32>
    %23 = arith.addf %1, %22 : vector<8x32xf32>
    %c0_16 = arith.constant 0 : index
    %c0_17 = arith.constant 0 : index
    %24 = vector.load %arg7[%c0_16, %c0_17] : memref<8x32xf32, #tpu.memory_space<vmem>>, vector<8x32xf32>
    tpu.vector_store %arg7[%c0_16, %c0_17], %23 {strides = array<i32>} : memref<8x32xf32, #tpu.memory_space<vmem>>, vector<8x32xf32>,
    return
  }
  func.func @transform_0(%arg0: i32) -> (i32, i32) {
    %c0_i32 = arith.constant 0 : i32
    %c0_i32_0 = arith.constant 0 : i32
    return %arg0, %c0_i32 : i32, i32
  }
  func.func @transform_1(%arg0: i32) -> (i32, i32) {
    %c0_i32 = arith.constant 0 : i32
    %c0_i32_0 = arith.constant 0 : i32
    return %arg0, %c0_i32 : i32, i32
  }
  func.func @transform_2(%arg0: i32) -> (i32, i32) {
    %c0_i32 = arith.constant 0 : i32
    %c0_i32_0 = arith.constant 0 : i32
    %c0_i32_1 = arith.constant 0 : i32
    return %c0_i32, %c0_i32_0 : i32, i32
  }
  func.func @transform_3(%arg0: i32) -> (i32, i32) {
    %c0_i32 = arith.constant 0 : i32
    %c0_i32_0 = arith.constant 0 : i32
    %c0_i32_1 = arith.constant 0 : i32
    return %c0_i32, %c0_i32_0 : i32, i32
  }
  func.func @transform_4(%arg0: i32) -> (i32, i32) {
    %c0_i32 = arith.constant 0 : i32
    %c0_i32_0 = arith.constant 0 : i32
    %c0_i32_1 = arith.constant 0 : i32
    return %c0_i32, %c0_i32_0 : i32, i32
  }
  func.func @transform_5(%arg0: i32) -> (i32, i32) {
    %c0_i32 = arith.constant 0 : i32
    %c0_i32_0 = arith.constant 0 : i32
    %c0_i32_1 = arith.constant 0 : i32
    return %c0_i32, %c0_i32_0 : i32, i32
  }
  func.func @transform_6(%arg0: i32) -> (i32, i32) {
    %c0_i32 = arith.constant 0 : i32
    %c0_i32_0 = arith.constant 0 : i32
    return %arg0, %c0_i32 : i32, i32
  }
}

</mosaic_0001>

<bundles_post_ra>
// kernel: tpu_custom_call.1
= control target key start
LH: loop header
LB: loop body
LE: loop exit
PB: predicated region body
PF: predicated region fallthrough
CT: control target
= control target key end

     0   :  { %s1500_s0 = inlined_call_operand.hbm [shape: f32[16,32], index: 0, kind: input, shape index: {}]   ;;  %s1501_s1 = inlined_call_operand.hbm [shape: f32[16,32], index: 1, kind: input, shape index: {}]   ;;  %s1502_s2 = inlined_call_operand.hbm [shape: f32[32,32], index: 2, kind: input, shape index: {}]   ;;  %s1503_s3 = inlined_call_operand.hbm [shape: f32[32,32], index: 3, kind: input, shape index: {}]   ;;  %s1504_s4 = inlined_call_operand.hbm [shape: f32[32,32], index: 4, kind: input, shape index: {}]   ;;  %s1505_s5 = inlined_call_operand.vmem [shape: f32[1,32], index: 5, kind: input, shape index: {}]   ;;  %s1506_s6 = inlined_call_operand.hbm [shape: f32[16,32], index: 6, kind: output, shape index: {}]  }
   0x1   :  { %1511 = sst [smem:[#allocation17_spill]] %s1502_s2 }
   0x2   :  { %1512 = sst [smem:[#allocation18_spill]] %s1503_s3 }
   0x3   :  { %1513 = sst [smem:[#allocation19_spill]] %s1504_s4 }
   0x4   :  { %11 = vsyncpa [#allocation3], 0 }
   0x5   :  { %13 = vsyncpa [#allocation3 + $0x1], 0 }
   0x6   :  { %14 = vsyncpa [#allocation6], 0 }
   0x7   :  { %16 = vsyncpa [#allocation6 + $0x1], 0 }
   0x8   :  { %17 = vsyncpa [#allocation9], 0 }
   0x9   :  { %18 = vsyncpa [#allocation4], 0 }
   0xa   :  { %20 = vsyncpa [#allocation4 + $0x1], 0  ;;  %s1184_s21 = smov 0   ;;  %s1186_s22 = smov 0  }
   0xb   :  { %s1188_s23 = smov 0   ;;  %s1190_s24 = smov 0  }
   0xc LB: > { %s1205_s25 = sadd.s32 4294967295, %s1136_s24   ;;  %s734_s26 = sadd.s32 4294967294, %s1136_s24   ;;  %s1136_s24 = sphi %s1190_s24, %s1537_s24   ;;  %s1132_s23 = sphi %s1188_s23, %s1536_s23   ;;  %s1128_s22 = sphi %s1186_s22, %s1535_s22   ;;  %s1124_s21 = sphi %s1184_s21, %s1534_s21  }
   0xd   : > { %p46_p0 = scmp.ne.s32.totalorder %s1128_s22, %s1124_s21  ;;  %p1507_p1 = scmp.eq.s32.totalorder %s1205_s25, 0 }
   0xe   : > { %p186_p3 = scmp.eq.s32.totalorder %s734_s26, 1  ;;  %p735_p5 = scmp.ge.s32.totalorder %s1136_s24, 1 }
   0xf   : > { %p1214_p4 = por %p1507_p1, %p46_p0  ;;  %p193_p7 = scmp.lt.s32.totalorder %s1136_s24, 3 }
  0x10   : > { %p1219_p6 = por %p186_p3, %p46_p0  ;;  %s1138_s30 = smov [#allocation7]  }
  0x11   : > { %s1514_s27 = scalar_select %p1214_p4, 1, 0 }
  0x12   : > { %s1515_s28 = scalar_select %p1219_p6, 1, 0 }
  0x13   : > { %p1224_p8 = pnand %p735_p5, %p193_p7  ;;  %s205_s7 = sshll.u32 %s1138_s30, 4  ;;  %s1228_s7 = int_to_ptr.vmem [resolvable:$true] %s205_s7 }
  0x14   : > { %s1139_s9 = smov [#allocation8]   ;;  %s1140_s11 = smov [#allocation10]  }
  0x15   : > { %s1516_s29 = scalar_select %p1224_p8, 1, 0 }
  0x16   : > { %p843_p9 = pneg %p1224_p8  ;;  %s218_s10 = sshll.u32 %s1139_s9, 4  ;;  %s1239_s10 = int_to_ptr.vmem [resolvable:$true] %s218_s10 }
  0x17   : > { %s1241_s12 = sshll.u32 %s1140_s11, 4  ;;  %s1518_s2 = sld [smem:[#allocation17_spill]]  ;;  %s232_s12 = int_to_ptr.vmem [resolvable:$true] %s1241_s12 }
  0x18   : > { %p1235_p11 = pnand %p843_p9, %p1507_p1 }
  0x1a   : > { %p1251_p13 = pneg %p1235_p11 }
  0x1d   : > { %s914_s15 = scalar_lea.hbm %s1518_s2, 512 }
  0x1e   : > { %p915_p12 = scmp.ne.s32.totalorder %s1518_s2, %s914_s15  ;;  %p921_p5 = scmp.lt.u32.totalorder %s914_s15, %s1518_s2 }
  0x20   : > { %p917_p0 = pnand %p1251_p13, %p915_p12 }
  0x22   : > { %p918_p3 = pneg %p917_p0 }
  0x24   : > { %p923_p7 = pnand %p921_p5, %p918_p3 }
  0x26   : > { %926 = shalt.err (!%p923_p7)
}
  0x27   : > { %s927_s26 = scalar_lea.vmem %s1228_s7, 512  ;;  %p935_p2 = scmp.lt.s32.totalorder %s1228_s7, %s1228_s7 }
  0x28   : > { %p928_p9 = scmp.ne.s32.totalorder %s1228_s7, %s927_s26  ;;  %p936_p6 = scmp.lt.s32.totalorder %s927_s26, %s927_s26 }
  0x2a   : > { %p930_p10 = pnand %p928_p9, %p1251_p13  ;;  %p937_p12 = por %p936_p6, %p935_p2 }
  0x2c   : > { %p931_p1 = pneg %p930_p10 }
  0x2e   : > { %p938_p0 = pnand %p937_p12, %p931_p1 }
  0x30   : > { %941 = shalt.err (!%p938_p0)
}
  0x31   : > { %s1141_s30 = smov 128   ;;  %s1142_s9 = smov 8  }
  0x32   : > { %846 = dma.hbm_to_vmem [thread:$0]  (!%p1235_p11), %s1518_s2, 512, %s1228_s7, [#allocation6], %s1141_s30, %s1141_s30, %s1142_s9  }
  0x33   : > { %s1520_s3 = sld [smem:[#allocation18_spill]] }
  0x39   : > { %s942_s16 = scalar_lea.hbm %s1520_s3, 512 }
  0x3a   : > { %p943_p1 = scmp.ne.s32.totalorder %s1520_s3, %s942_s16  ;;  %p949_p10 = scmp.lt.u32.totalorder %s942_s16, %s1520_s3 }
  0x3c   : > { %p945_p2 = pnand %p943_p1, %p1251_p13 }
  0x3e   : > { %p946_p6 = pneg %p945_p2 }
  0x40   : > { %p951_p3 = pnand %p949_p10, %p946_p6 }
  0x42   : > { %954 = shalt.err (!%p951_p3)
}
  0x43   : > { %s955_s7 = scalar_lea.vmem %s1239_s10, 512  ;;  %p963_p12 = scmp.lt.s32.totalorder %s1239_s10, %s1239_s10 }
  0x44   : > { %p956_p5 = scmp.ne.s32.totalorder %s1239_s10, %s955_s7  ;;  %p964_p0 = scmp.lt.s32.totalorder %s955_s7, %s955_s7 }
  0x46   : > { %p958_p7 = pnand %p956_p5, %p1251_p13  ;;  %p965_p1 = por %p964_p0, %p963_p12 }
  0x48   : > { %p959_p9 = pneg %p958_p7 }
  0x4a   : > { %p966_p2 = pnand %p965_p1, %p959_p9 }
  0x4c   : > { %969 = shalt.err (!%p966_p2)
}
  0x4d   : > { %849 = dma.hbm_to_vmem [thread:$0]  (!%p1235_p11), %s1520_s3, 512, %s1239_s10, [#allocation9], %s1141_s30, %s1141_s30, %s1142_s9  }
  0x4e   : > { %s1521_s4 = sld [smem:[#allocation19_spill]] }
  0x54   : > { %s970_s16 = scalar_lea.hbm %s1521_s4, 512 }
  0x55   : > { %p971_p6 = scmp.ne.s32.totalorder %s1521_s4, %s970_s16  ;;  %p977_p5 = scmp.lt.u32.totalorder %s970_s16, %s1521_s4 }
  0x57   : > { %p973_p10 = pnand %p971_p6, %p1251_p13 }
  0x59   : > { %p974_p3 = pneg %p973_p10 }
  0x5b   : > { %p979_p7 = pnand %p977_p5, %p974_p3 }
  0x5d   : > { %982 = shalt.err (!%p979_p7)
}
  0x5e   : > { %s983_s7 = scalar_lea.vmem %s232_s12, 512  ;;  %p991_p1 = scmp.lt.s32.totalorder %s232_s12, %s232_s12 }
  0x5f   : > { %p984_p9 = scmp.ne.s32.totalorder %s232_s12, %s983_s7  ;;  %p992_p2 = scmp.lt.s32.totalorder %s983_s7, %s983_s7 }
  0x61   : > { %p986_p12 = pnand %p984_p9, %p1251_p13  ;;  %p993_p4 = por %p992_p2, %p991_p1 }
  0x63   : > { %p987_p0 = pneg %p986_p12 }
  0x65   : > { %p994_p8 = pnand %p993_p4, %p987_p0 }
  0x67   : > { %997 = shalt.err (!%p994_p8)
}
  0x68   : > { %852 = dma.hbm_to_vmem [thread:$0]  (!%p1235_p11), %s1521_s4, 512, %s232_s12, [#allocation9], %s1141_s30, %s1141_s30, %s1142_s9  }
  0x69   : > { %s1324_s18 = sadd.s32 1, %s1136_s24   ;;  %s33_s13 = sadd.s32 1, %s1132_s23 }
  0x6a   : > { %s30_s8 = ssub.s32 %s1136_s24, %s1324_s18  ;;  %p40_p8 = scmp.ne.s32.totalorder %s1132_s23, %s1128_s22 }
  0x6b   : > { %p31_p4 = scmp.eq.s32.totalorder %s30_s8, 0  ;;  %p41_p13 = scmp.eq.s32.totalorder %s1136_s24, 0 }
  0x6c   : > { %p867_p6 = scmp.lt.s32.totalorder %s1136_s24, 2  ;;  %p1522_p3 = scmp.eq.s32.totalorder %s1205_s25, 1 }
  0x6d   : > { %s1334_s14 = scalar_select %p31_p4, %s1132_s23, %s33_s13  }
  0x6e   : > { %p42_p10 = por %p41_p13, %p40_p8  ;;  %p1338_p5 = por %p1522_p3, %p40_p8 }
  0x6f   : > { %s248_s16 = sand.u32 1, %s1132_s23   ;;  %s741_s17 = sshll.u32 %s1136_s24, 7 }
  0x70   : > { %s1523_s15 = scalar_select %p1338_p5, 1, 0 }
  0x71   : > { %s1344_s12 = sshll.u32 %s248_s16, 3  ;;  %s1349_s19 = scalar_lea.hbm %s1500_s0, %s741_s17 }
  0x72   : > { %s252_s20 = scalar_lea.vmem [#allocation2], %s1344_s12  ;;  %p1352_p11 = pnand %p867_p6, %p42_p10 }
  0x73   : > { %s259_s26 = sshll.u32 %s252_s20, 4  ;;  %s1361_s8 = scalar_lea.hbm %s1501_s1, %s741_s17  ;;  %s1356_s26 = int_to_ptr.vmem [resolvable:$true] %s259_s26 }
  0x74   : > { %s249_s13 = scalar_lea.sflag [#allocation3], %s248_s16  ;;  %s998_s30 = scalar_lea.hbm %s1349_s19, 128 }
  0x75   : > { %p999_p7 = scmp.ne.s32.totalorder %s1349_s19, %s998_s30  ;;  %p1000_p9 = pneg %p1352_p11 }
  0x76   : > { %s1003_s2 = scalar_lea.hbm %s1500_s0, 256  ;;  %p1004_p1 = scmp.lt.u32.totalorder %s1349_s19, %s1500_s0 }
  0x77   : > { %p1001_p12 = pnand %p1000_p9, %p999_p7  ;;  %p1005_p2 = scmp.lt.u32.totalorder %s1003_s2, %s998_s30 }
  0x78   : > { %p1007_p8 = scmp.lt.u32.totalorder %s998_s30, %s1349_s19 }
  0x79   : > { %p1002_p0 = pneg %p1001_p12  ;;  %p1006_p4 = por %p1005_p2, %p1004_p1 }
  0x7b   : > { %p1008_p13 = por %p1007_p8, %p1006_p4 }
  0x7d   : > { %p1009_p6 = pnand %p1008_p13, %p1002_p0 }
  0x7f   : > { %1012 = shalt.err (!%p1009_p6)
}
  0x80   : > { %s1013_s16 = scalar_lea.vmem %s1356_s26, 128  ;;  %s1143_s17 = smov [#allocation2]  }
  0x81   : > { %p1014_p10 = scmp.ne.s32.totalorder %s1356_s26, %s1013_s16  ;;  %s1018_s10 = sshll.u32 %s1143_s17, 4  ;;  %s1019_s10 = int_to_ptr.vmem [resolvable:$false] %s1018_s10 }
  0x82   : > { %s1020_s3 = scalar_lea.vmem %s1019_s10, 256  ;;  %p1021_p12 = scmp.lt.s32.totalorder %s1356_s26, %s1019_s10 }
  0x83   : > { %p1016_p3 = pnand %p1014_p10, %p1000_p9  ;;  %p1022_p1 = scmp.lt.s32.totalorder %s1020_s3, %s1013_s16 }
  0x85   : > { %p1017_p7 = pneg %p1016_p3  ;;  %p1023_p2 = por %p1022_p1, %p1021_p12 }
  0x87   : > { %p1024_p4 = pnand %p1023_p2, %p1017_p7 }
  0x89   : > { %1027 = shalt.err (!%p1024_p4)
}
  0x8a   : > { %856 = dma.hbm_to_vmem [thread:$0]  (!%p1352_p11), %s1349_s19, 128, %s1356_s26, %s249_s13  }
  0x8b   : > { %s266_s2 = sand.u32 1, %s1136_s24   ;;  %s270_s4 = scalar_lea.vmem [#allocation5], %s1344_s12 }
  0x8c   : > { %s277_s11 = sshll.u32 %s270_s4, 4  ;;  %s267_s30 = scalar_lea.sflag [#allocation6], %s266_s2  ;;  %s278_s11 = int_to_ptr.vmem [resolvable:$true] %s277_s11 }
  0x8d   : > { %s1028_s9 = scalar_lea.hbm %s1361_s8, 128  ;;  %s1033_s17 = scalar_lea.hbm %s1501_s1, 256 }
  0x8e   : > { %p1029_p0 = scmp.ne.s32.totalorder %s1361_s8, %s1028_s9  ;;  %p1034_p6 = scmp.lt.u32.totalorder %s1361_s8, %s1501_s1 }
  0x8f   : > { %p1035_p10 = scmp.lt.u32.totalorder %s1033_s17, %s1028_s9  ;;  %p1037_p7 = scmp.lt.u32.totalorder %s1028_s9, %s1361_s8 }
  0x90   : > { %p1031_p8 = pnand %p1029_p0, %p1000_p9 }
  0x91   : > { %p1036_p3 = por %p1035_p10, %p1034_p6 }
  0x92   : > { %p1032_p13 = pneg %p1031_p8 }
  0x93   : > { %p1038_p12 = por %p1037_p7, %p1036_p3 }
  0x95   : > { %p1039_p1 = pnand %p1038_p12, %p1032_p13 }
  0x97   : > { %1042 = shalt.err (!%p1039_p1)
}
  0x98   : > { %s1043_s12 = scalar_lea.vmem %s278_s11, 128  ;;  %s1144_s19 = smov [#allocation5]  }
  0x99   : > { %p1044_p2 = scmp.ne.s32.totalorder %s278_s11, %s1043_s12  ;;  %s1048_s26 = sshll.u32 %s1144_s19, 4  ;;  %s1049_s26 = int_to_ptr.vmem [resolvable:$false] %s1048_s26 }
  0x9a   : > { %s1050_s13 = scalar_lea.vmem %s1049_s26, 256  ;;  %p1051_p8 = scmp.lt.s32.totalorder %s278_s11, %s1049_s26 }
  0x9b   : > { %p1046_p4 = pnand %p1044_p2, %p1000_p9  ;;  %p1052_p5 = scmp.lt.s32.totalorder %s1050_s13, %s1043_s12 }
  0x9d   : > { %p1047_p0 = pneg %p1046_p4  ;;  %p1053_p6 = por %p1052_p5, %p1051_p8 }
  0x9f   : > { %p1054_p10 = pnand %p1053_p6, %p1047_p0 }
  0xa1   : > { %1057 = shalt.err (!%p1054_p10)
}
  0xa2   : > { %859 = dma.hbm_to_vmem [thread:$0]  (!%p1352_p11), %s1361_s8, 128, %s278_s11, %s267_s30  }
  0xa3   : > { %p1525_p13 = scmp.ne.s32.totalorder %s1516_s29, 0 }
  0xa4   : > { %s1412_s2 = sand.u32 (!%p1525_p13), 1, %s1128_s22   ;;  %p1526_p5 = scmp.ne.s32.totalorder (!%p1525_p13), %s1514_s27, 0 }
  0xa5   : > { %286 = sbr.rel (%p1525_p13) target bundleno = 452 (0x1c4), region = 44  ;;  %s1415_s4 = sshll.u32 (!%p1525_p13), %s1412_s2, 3 }
  0xa6   : > { %s289_s9 = scalar_lea.sflag (!%p1525_p13), [#allocation3], %s1412_s2  ;;  %s292_s20 = scalar_lea.vmem (!%p1525_p13), [#allocation2], %s1415_s4 }
  0xac   : > { %1103 = dma.done.wait (%p1526_p5), %s289_s9, 128  }
  0xad   : > { %1105 = vsyncadd (%p1526_p5), %s289_s9, 4294967168  ;;  %s297_s29 = sand.u32 1, %s1205_s25   ;;  %s301_s8 = scalar_lea.vmem [#allocation5], %s1415_s4 }
  0xae   : > { %s298_s7 = scalar_lea.sflag [#allocation6], %s297_s29 }
  0xaf   : > { %1107 = dma.done.wait (%p1526_p5), %s298_s7, 128  }
  0xb0   : > { %1109 = vsyncadd (%p1526_p5), %s298_s7, 4294967168  ;;  %p1527_p11 = scmp.eq.s32.totalorder %s1205_s25, 0 }
  0xb2   : > { %1111 = dma.done.wait (%p1527_p11), [#allocation6], 512   ;;  %p1528_p9 = pmov %p1527_p11 }
  0xb4   : > { %1113 = vsyncadd (%p1528_p9), [#allocation6], 4294966784  ;;  %p1529_p3 = pmov %p1528_p9 }
  0xb6   : > { %1115 = dma.done.wait (%p1529_p3), [#allocation9], 1024   ;;  %p1530_p7 = pmov %p1529_p3 }
  0xb7   : > { %v1145_v0 = vmov 0.0|0.0   ;;  %vm1146_vm0 = vmmov 0   ;;  %v1147_v1 = vmov 0.0   ;;  %v353_v2 = vld [vmem:[#allocation8] sm:$0xff]  ;;  %v354_v3 = vld [vmem:[#allocation8 + $0x8] sm:$0xff]  ;;  %v355_v7 = vld [vmem:[#allocation8 + $0x10] sm:$0xff] }
  0xb8   : > { %1117 = vsyncadd (%p1530_p7), [#allocation9], 4294966272  ;;  %807 = vmatprep.subr.bf16.mxu0 %v1145_v0  ;;  %813 = vmatprep.subr.bf16.mxu1 %v1145_v0  ;;  %v349_v4 = vld [vmem:[#allocation7] sm:$0xff]  ;;  %v808_v5 = vpack.c.bf16 %v354_v3, %v353_v2  ;;  %v350_v6 = vld [vmem:[#allocation7 + $0x8] sm:$0xff]  ;;  %vm357_vm1 = vcmask 261120   ;;  %s756_s30 = sshll.u32 %s1205_s25, 7 }
  0xb9   : > { %782 = vmatprep.mubr.msk.f32.mxu0 %vm1146_vm0, %v1147_v1  ;;  %793 = vmatprep.mubr.msk.f32.mxu1 %vm1146_vm0, %v1147_v1  ;;  %v356_v8 = vld [vmem:[#allocation8 + $0x18] sm:$0xff]  ;;  %v814_v9 = vpack.c.bf16 %v350_v6, %v349_v4  ;;  %v351_v10 = vld [vmem:[#allocation7 + $0x10] sm:$0xff]  ;;  %v505_v14 = vld [vmem:[#allocation10] sm:$0xff]  ;;  %s346_s16 = scalar_lea.vmem [#allocation11], %s1415_s4  ;;  %s1455_s12 = scalar_lea.hbm %s1506_s6, %s756_s30 }
  0xba   : > { %v352_v11 = vld [vmem:[#allocation7 + $0x18] sm:$0xff]  ;;  %809 = vmatpush3.bf16.msra.mxu0 %v808_v5  ;;  %v811_v12 = vpack.c.bf16 %v356_v8, %v355_v7  ;;  %v506_v15 = vld [vmem:[#allocation10 + $0x8] sm:$0xff]  ;;  %v507_v19 = vld [vmem:[#allocation10 + $0x10] sm:$0xff]  ;;  %s613_s17 = sshll.u32 %s346_s16, 4  ;;  %s600_s19 = scalar_lea.sflag [#allocation4], %s1412_s2  ;;  %s1457_s17 = int_to_ptr.vmem [resolvable:$true] %s613_s17 }
  0xbb   : > { %815 = vmatpush3.bf16.msra.mxu1 %v814_v9  ;;  %810 = vmatprep.subr.bf16.mxu0 %v1145_v0  ;;  %v817_v13 = vpack.c.bf16 %v352_v11, %v351_v10  ;;  %v348_v16 = vld [vmem:[%s301_s8] sm:$0xff]  ;;  %v820_v17 = vpack.c.bf16 %v506_v15, %v505_v14  ;;  %v347_v18 = vld [vmem:[%s292_s20] sm:$0xff]  ;;  %s1058_s26 = scalar_lea.vmem %s1457_s17, 128  ;;  %p1531_p1 = scmp.ne.s32.totalorder %s1523_s15, 0 }
  0xbc   : > { %816 = vmatprep.subr.bf16.mxu1 %v1145_v0  ;;  %v508_v20 = vld [vmem:[#allocation10 + $0x18] sm:$0xff]  ;;  %v504_v22 = vmul.f32 %v348_v16, %v347_v18  ;;  %v754_v29 = vld [vmem:[%s1505_s5] ss:$0 sm:$0xff]  ;;  %v595_v35 = vsub.f32 %v347_v18, %v348_v16  ;;  %p1059_p12 = scmp.ne.s32.totalorder %s1457_s17, %s1058_s26  ;;  %s1148_s25 = smov [#allocation11]  }
  0xbd   : > { %v823_v21 = vpack.c.bf16 %v508_v20, %v507_v19  ;;  %s1062_s13 = sshll.u32 %s1148_s25, 4  ;;  %s1063_s13 = int_to_ptr.vmem [resolvable:$false] %s1062_s13 }
  0xbe   : > { %812 = vmatpush3.bf16.msra.mxu0 %v811_v12  ;;  %p1060_p2 = pnand %p1059_p12, %p1531_p1  ;;  %s1064_s4 = scalar_lea.vmem %s1063_s13, 256 }
  0xbf   : > { %818 = vmatpush3.bf16.msra.mxu1 %v817_v13  ;;  %819 = vmatprep.subr.bf16.mxu0 %v1145_v0  ;;  %p1065_p0 = scmp.lt.s32.totalorder %s1457_s17, %s1063_s13  ;;  %p1066_p8 = scmp.lt.s32.totalorder %s1064_s4, %s1058_s26 }
  0xc0   : > { %p1061_p4 = pneg %p1060_p2 }
  0xc1   : > { %783 = vmatmul.mubr.msk.f32.vlgmr.msra.gmra.mrb[0].mxu0 %vm357_vm1, %v348_v16  ;;  %p1067_p6 = por %p1066_p8, %p1065_p0 }
  0xc2   : > { %794 = vmatmul.mubr.msk.f32.vlgmr.msra.gmra.mrb[0].mxu1 %vm357_vm1, %v347_v18  ;;  %821 = vmatpush3.bf16.msra.mxu0 %v820_v17 }
  0xc3   : > { %822 = vmatprep.subr.bf16.mxu0 %v1145_v0  ;;  %804 = vmatprep.mubr.msk.f32.mxu0 %vm1146_vm0, %v1147_v1  ;;  %p1068_p10 = pnand %p1067_p6, %p1061_p4 }
  0xc6   : > { %824 = vmatpush3.bf16.msra.mxu0 %v823_v21 }
  0xc9   : > { %805 = vmatmul.mubr.msk.f32.vlgmr.msra.gmra.mrb[2].mxu0 %vm357_vm1, %v504_v22 }
 0x194   : > { %v427_v23 = vpop.f32.mrb[0].mxu0 }
 0x195   : > { %v784_v24 = vpop.f32.mrb[1].mxu0  ;;  %v500_v25 = vpop.f32.mrb[0].mxu1 }
 0x196   : > { %v501_v26 = vadd.f32 %v500_v25, %v427_v23  ;;  %v795_v27 = vpop.f32.mrb[1].mxu1 }
 0x19c   : > { %v578_v28 = vpop.f32.mrb[2].mxu0 }
 0x19d   : > { %v582_v30 = vadd.f32 %v578_v28, %v501_v26  ;;  %v806_v31 = vpop.f32.mrb[3].mxu0 }
 0x19f   : > { %v590_v32 = vadd.f32 %v754_v29, %v582_v30 }
 0x1a1   : > { %v591_v33 = vmul.f32 0.5, %v590_v32 }
 0x1a3   : > { %912 = vtanh.f32 %v591_v33 }
 0x1ad   : > { %v913_v34 = vpop.eup %912 }
 0x1ae   : > { %v593_v36 = vmul.f32 0.5, %v913_v34 }
 0x1b0   : > { %v594_v37 = vadd.f32 0.5, %v593_v36 }
 0x1b2   : > { %v596_v38 = vmul.f32 %v595_v35, %v594_v37 }
 0x1b4   : > { %v597_v39 = vadd.f32 %v596_v38, %v348_v16 }
 0x1b6   : > { %598 = vst.msk [vmem:[%s346_s16] sm:$0xff] %vm357_vm1, %v597_v39 }
 0x1b7   : > { %1071 = shalt.err (!%p1068_p10)
}
 0x1b8   : > { %s1072_s2 = scalar_lea.hbm %s1455_s12, 128  ;;  %s1076_s29 = scalar_lea.hbm %s1506_s6, 256 }
 0x1b9   : > { %p1073_p13 = scmp.ne.s32.totalorder %s1455_s12, %s1072_s2  ;;  %p1077_p9 = scmp.lt.u32.totalorder %s1455_s12, %s1506_s6 }
 0x1ba   : > { %p1078_p3 = scmp.lt.u32.totalorder %s1076_s29, %s1072_s2  ;;  %p1080_p12 = scmp.lt.u32.totalorder %s1072_s2, %s1455_s12 }
 0x1bb   : > { %p1074_p5 = pnand %p1073_p13, %p1531_p1 }
 0x1bc   : > { %p1079_p7 = por %p1078_p3, %p1077_p9 }
 0x1bd   : > { %p1075_p11 = pneg %p1074_p5 }
 0x1be   : > { %p1081_p2 = por %p1080_p12, %p1079_p7 }
 0x1c0   : > { %p1082_p4 = pnand %p1081_p2, %p1075_p11 }
 0x1c2   : > { %1085 = shalt.err (!%p1082_p4)
}
 0x1c3   : > { %841 = dma.vmem_to_hbm [thread:$0]  (%p1531_p1), %s1457_s17, 128, %s1455_s12, %s600_s19  }
 0x1c4 PF: > { %s625_s27 = sand.u32 1, %s1124_s21   ;;  %p1532_p0 = scmp.ne.s32.totalorder %s1515_s28, 0 }
 0x1c5   : > { %p1533_p8 = scmp.ge.s32.totalorder %s1136_s24, 2  ;;  %s626_s11 = scalar_lea.sflag [#allocation4], %s625_s27 }
 0x1c7   : > { %p861_p6 = pnand %p1533_p8, %p1532_p0 }
 0x1c9   : > { %1119 = dma.done.wait (!%p861_p6), %s626_s11, 128  }
 0x1ca   : > { %1121 = vsyncadd (!%p861_p6), %s626_s11, 4294967168  ;;  %p23_p10 = scmp.ge.s32.totalorder %s1324_s18, 4   ;;  %s1534_s21 = smov %s1128_s22 }
 0x1cb   : > { %s1535_s22 = smov %s1132_s23  ;;  %s1536_s23 = smov %s1334_s14 }
 0x1cc   : > { %s1537_s24 = smov %s1324_s18  ;;  %25 = sbr.rel (!%p23_p10) target bundleno = 12 (0xc), region = 114 }
 0x1d3   :  { %631 = vsyncpa [#allocation3], 1 }
 0x1d4   :  { %633 = vsyncpa [#allocation3 + $0x1], 1 }
 0x1d5   :  { %634 = vsyncpa [#allocation6], 1 }
 0x1d6   :  { %636 = vsyncpa [#allocation6 + $0x1], 1 }
 0x1d7   :  { %637 = vsyncpa [#allocation9], 1 }
 0x1d8   :  { %638 = vsyncpa [#allocation4], 1 }
 0x1d9   :  { %640 = vsyncpa [#allocation4 + $0x1], 1 }

</bundles_post_ra>
